<compile_context>
chip_gen: v7x
topology: tpu7x:2x2x1
jax: 0.10.0
libtpu: 0.0.40
codegen_flags: <defaults>
</compile_context>

<pallas_src>
import functools

import jax
import jax.numpy as jnp
from jax.experimental import pallas as pl
from jax.experimental.pallas import tpu as pltpu


EULER_PAD = 8  # 2 real Euler/output rows padded to one full sublane group


def _round_up(n, m):
    return ((n + m - 1) // m) * m


# ---------------- Pallas kernel: whole forward, batch-on-lanes ----------------
def gresnet_kernel(x_ref, wf_ref, bf_ref, w2_ref, b2_ref, w3_ref, b3_ref, o_ref, *, hidden):
    # Every value here is (features, TILE_N): features on sublanes, batch on lanes.
    xT = x_ref[...]                                                           # (Cin, TILE_N)

    # Fused first layer: rows [0, hidden) = W1, rows [hidden, hidden+2) = Euler matrix A,
    # remaining rows are zero padding. One MXU matmul covers both NN layer 1 and L_euler.
    z = jnp.dot(wf_ref[...], xT, preferred_element_type=jnp.float32) + bf_ref[...]  # (HP, TILE_N)
    h = jnp.tanh(z[:hidden, :])                                               # (H, TILE_N)
    lin = z[hidden:hidden + EULER_PAD, :]                                     # (8, TILE_N); rows 2..7 zero

    h = jnp.tanh(jnp.dot(w2_ref[...], h, preferred_element_type=jnp.float32) + b2_ref[...])
    nn = jnp.dot(w3_ref[...], h, preferred_element_type=jnp.float32) + b3_ref[...]   # (8, TILE_N)

    o_ref[...] = (lin + nn).astype(o_ref.dtype)


# ---------------- wrapper: layout flip, batch tiling, padding ----------------
def gresnet_forward(x, packed, *, tile_n=512):
    N, cin = x.shape
    hidden = packed["W2t"].shape[0]
    hp = packed["Wf"].shape[0]

    # Pick a lane-aligned batch tile and zero-pad the batch to a whole number of tiles.
    tile = min(tile_n, _round_up(max(N, 1), 128))
    n_pad = _round_up(N, tile)

    xT = jnp.transpose(x)                                    # (Cin, N): batch on the lane axis
    if n_pad != N:
        xT = jnp.pad(xT, ((0, 0), (0, n_pad - N)))

    grid = (n_pad // tile,)

    args = (xT, packed["Wf"], packed["bf"], packed["W2t"], packed["b2"],
            packed["W3p"], packed["b3p"])

    in_specs = [pl.BlockSpec((cin, tile), lambda i: (0, i))]          # streamed input tiles
    in_specs += [pl.BlockSpec(a.shape, lambda i: (0, 0)) for a in args[1:]]  # resident weights
    out_specs = pl.BlockSpec((EULER_PAD, tile), lambda i: (0, i))

    # Advisory cost hint for XLA scheduling around the custom call.
    flops = 2 * n_pad * (cin * hp + hidden * hidden + hidden * EULER_PAD)
    transcendentals = 2 * n_pad * hidden
    weight_bytes = 4 * sum(int(packed[k].size)
                           for k in ("Wf", "bf", "W2t", "b2", "W3p", "b3p"))
    bytes_accessed = 4 * n_pad * (cin + EULER_PAD) + weight_bytes

    out = pl.pallas_call(
        functools.partial(gresnet_kernel, hidden=hidden),
        grid=grid,
        in_specs=in_specs,
        out_specs=out_specs,
        out_shape=jax.ShapeDtypeStruct((EULER_PAD, n_pad), jnp.float32),
        compiler_params=pltpu.CompilerParams(dimension_semantics=("parallel",)),
        cost_estimate=pl.CostEstimate(flops=flops,
                                      transcendentals=transcendentals,
                                      bytes_accessed=bytes_accessed),
    )(*args)

    # Drop the padded output rows / batch columns, flip back to (N, 2).
    return jnp.transpose(out[:2, :N])


# ---------------- deterministic parameter construction ----------------
def make_params(in_channels, out_channels, hidden, num_of_time_points, key):
    assert in_channels >= 2, "L_euler needs at least 2 input channels"
    assert out_channels == 2, "L_euler output is 2-wide; outChannels must be 2"

    T_total, c, m, k = 10.0, 2.0, 1.0, 1.0
    dt = T_total / (num_of_time_points - 1)
    A = jnp.eye(2, dtype=jnp.float32) + dt * jnp.array([[0.0, 1.0],
                                                        [-k / m, -c / m]], dtype=jnp.float32)

    k1, k2, k3, kb1, kb2, kb3 = jax.random.split(key, 6)

    def init_w(kk, shape):                      # torch nn.Linear layout: (out_features, in_features)
        lim = 1.0 / jnp.sqrt(jnp.float32(shape[1]))
        return jax.random.uniform(kk, shape, jnp.float32, -lim, lim)

    def init_b(kk, n):
        return jax.random.uniform(kk, (n,), jnp.float32, -0.1, 0.1)

    return {
        "A": A,
        "W1t": init_w(k1, (hidden, in_channels)), "b1": init_b(kb1, hidden),
        "W2t": init_w(k2, (hidden, hidden)),      "b2": init_b(kb2, hidden),
        "W3t": init_w(k3, (out_channels, hidden)), "b3": init_b(kb3, out_channels),
    }


def pack_params(raw):
    """Pack raw (torch-layout) params into the fused, lane-dense kernel layout."""
    hidden, in_channels = raw["W1t"].shape
    hp = hidden + EULER_PAD

    Wf = jnp.zeros((hp, in_channels), jnp.float32)
    Wf = Wf.at[:hidden, :].set(raw["W1t"])
    Wf = Wf.at[hidden:hidden + 2, :2].set(raw["A"])           # Euler matrix fused as extra rows
    bf = jnp.zeros((hp, 1), jnp.float32).at[:hidden, 0].set(raw["b1"])

    W3p = jnp.zeros((EULER_PAD, hidden), jnp.float32).at[:2, :].set(raw["W3t"])
    b3p = jnp.zeros((EULER_PAD, 1), jnp.float32).at[:2, 0].set(raw["b3"])

    return {
        "Wf": Wf, "bf": bf,
        "W2t": raw["W2t"], "b2": raw["b2"].reshape(hidden, 1),
        "W3p": W3p, "b3p": b3p,
    }


# ---------------- pure-JAX reference ----------------
def gresnet_ref(x, raw):
    lin = x[:, :2] @ raw["A"].T
    h = jnp.tanh(x @ raw["W1t"].T + raw["b1"])
    h = jnp.tanh(h @ raw["W2t"].T + raw["b2"])
    return lin + h @ raw["W3t"].T + raw["b3"]


if __name__ == "__main__":
    # Synthetic config: inChannels=4, outChannels=2, numberOfLayers=2, sizeOfLayer=32,
    # activation=tanh, numOfTimePoints=101 (dt=0.1).
    IN_CH, OUT_CH, HIDDEN, NTP = 4, 2, 32, 101

    key = jax.random.PRNGKey(0)
    kx, kx2, kp = jax.random.split(key, 3)

    raw = make_params(IN_CH, OUT_CH, HIDDEN, NTP, kp)
    packed = pack_params(raw)

    # Case 1: batch spanning multiple grid tiles (exercises the pipelined grid).
    x = jax.random.normal(kx, (512, IN_CH), dtype=jnp.float32)
    out = jax.block_until_ready(gresnet_forward(x, packed, tile_n=256))
    ref = gresnet_ref(x, raw)
    assert out.shape == (512, OUT_CH)
    assert jnp.allclose(out, ref, atol=2e-5, rtol=2e-5), "mismatch vs reference (batch=512)"

    # Case 2: small ragged batch (exercises the zero-padding path).
    x2 = jax.random.normal(kx2, (8, IN_CH), dtype=jnp.float32)
    out2 = jax.block_until_ready(gresnet_forward(x2, packed))
    ref2 = gresnet_ref(x2, raw)
    assert out2.shape == (8, OUT_CH)
    assert jnp.allclose(out2, ref2, atol=2e-5, rtol=2e-5), "mismatch vs reference (batch=8)"

    print("KERNEL_OK")
</pallas_src>

<mosaic_0001>
module attributes {stable_mosaic.version = 11 : i64} {
  func.func @gresnet_kernel(%arg0: i32, %arg1: memref<4x256xf32, #tpu.memory_space<vmem>>, %arg2: memref<40x4xf32, #tpu.memory_space<vmem>>, %arg3: memref<40x1xf32, #tpu.memory_space<vmem>>, %arg4: memref<32x32xf32, #tpu.memory_space<vmem>>, %arg5: memref<32x1xf32, #tpu.memory_space<vmem>>, %arg6: memref<8x32xf32, #tpu.memory_space<vmem>>, %arg7: memref<8x1xf32, #tpu.memory_space<vmem>>, %arg8: memref<8x256xf32, #tpu.memory_space<vmem>>) attributes {dimension_semantics = [#tpu.dimension_semantics<parallel>], iteration_bounds = array<i64: 2>, scalar_prefetch = 0 : i64, scratch_operands = 0 : i64, tpu.core_type = #tpu.core_type<tc>, window_params = [{transform_indices = @transform_0, window_bounds = array<i64: 4, 256>}, {pipeline_mode = #tpu.pipeline_mode<synchronous>, transform_indices = @transform_1, window_bounds = array<i64: 40, 4>}, {pipeline_mode = #tpu.pipeline_mode<synchronous>, transform_indices = @transform_2, window_bounds = array<i64: 40, 1>}, {pipeline_mode = #tpu.pipeline_mode<synchronous>, transform_indices = @transform_3, window_bounds = array<i64: 32, 32>}, {pipeline_mode = #tpu.pipeline_mode<synchronous>, transform_indices = @transform_4, window_bounds = array<i64: 32, 1>}, {pipeline_mode = #tpu.pipeline_mode<synchronous>, transform_indices = @transform_5, window_bounds = array<i64: 8, 32>}, {pipeline_mode = #tpu.pipeline_mode<synchronous>, transform_indices = @transform_6, window_bounds = array<i64: 8, 1>}, {transform_indices = @transform_7, window_bounds = array<i64: 8, 256>}]} {
    %c0 = arith.constant 0 : index
    %c0_0 = arith.constant 0 : index
    %0 = vector.load %arg1[%c0, %c0_0] : memref<4x256xf32, #tpu.memory_space<vmem>>, vector<4x256xf32>
    %c0_1 = arith.constant 0 : index
    %c0_2 = arith.constant 0 : index
    %1 = vector.load %arg2[%c0_1, %c0_2] : memref<40x4xf32, #tpu.memory_space<vmem>>, vector<40x4xf32>
    %cst = arith.constant dense<0.000000e+00> : vector<40x256xf32>
    %2 = tpu.matmul %1, %0, %cst {dimension_numbers = #tpu.dot_dimension_numbers<[1], [0], [0], [1], [0, 0, 1, 1], [], []>} : vector<40x4xf32>, vector<4x256xf32>, vector<40x256xf32> -> vector<40x256xf32>
    %c0_3 = arith.constant 0 : index
    %c0_4 = arith.constant 0 : index
    %3 = vector.load %arg3[%c0_3, %c0_4] : memref<40x1xf32, #tpu.memory_space<vmem>>, vector<40x1xf32>
    %4 = vector.broadcast %3 : vector<40x1xf32> to vector<40x256xf32>
    %5 = arith.addf %2, %4 : vector<40x256xf32>
    %6 = vector.extract_strided_slice %5 {offsets = [0, 0], sizes = [32, 256], strides = [1, 1]} : vector<40x256xf32> to vector<32x256xf32>
    %7 = math.tanh %6 : vector<32x256xf32>
    %8 = vector.extract_strided_slice %5 {offsets = [32, 0], sizes = [8, 256], strides = [1, 1]} : vector<40x256xf32> to vector<8x256xf32>
    %c0_5 = arith.constant 0 : index
    %c0_6 = arith.constant 0 : index
    %9 = vector.load %arg4[%c0_5, %c0_6] : memref<32x32xf32, #tpu.memory_space<vmem>>, vector<32x32xf32>
    %cst_7 = arith.constant dense<0.000000e+00> : vector<32x256xf32>
    %10 = tpu.matmul %9, %7, %cst_7 {dimension_numbers = #tpu.dot_dimension_numbers<[1], [0], [0], [1], [0, 0, 1, 1], [], []>} : vector<32x32xf32>, vector<32x256xf32>, vector<32x256xf32> -> vector<32x256xf32>
    %c0_8 = arith.constant 0 : index
    %c0_9 = arith.constant 0 : index
    %11 = vector.load %arg5[%c0_8, %c0_9] : memref<32x1xf32, #tpu.memory_space<vmem>>, vector<32x1xf32>
    %12 = vector.broadcast %11 : vector<32x1xf32> to vector<32x256xf32>
    %13 = arith.addf %10, %12 : vector<32x256xf32>
    %14 = math.tanh %13 : vector<32x256xf32>
    %c0_10 = arith.constant 0 : index
    %c0_11 = arith.constant 0 : index
    %15 = vector.load %arg6[%c0_10, %c0_11] : memref<8x32xf32, #tpu.memory_space<vmem>>, vector<8x32xf32>
    %cst_12 = arith.constant dense<0.000000e+00> : vector<8x256xf32>
    %16 = tpu.matmul %15, %14, %cst_12 {dimension_numbers = #tpu.dot_dimension_numbers<[1], [0], [0], [1], [0, 0, 1, 1], [], []>} : vector<8x32xf32>, vector<32x256xf32>, vector<8x256xf32> -> vector<8x256xf32>
    %c0_13 = arith.constant 0 : index
    %c0_14 = arith.constant 0 : index
    %17 = vector.load %arg7[%c0_13, %c0_14] : memref<8x1xf32, #tpu.memory_space<vmem>>, vector<8x1xf32>
    %18 = vector.broadcast %17 : vector<8x1xf32> to vector<8x256xf32>
    %19 = arith.addf %16, %18 : vector<8x256xf32>
    %20 = arith.addf %8, %19 : vector<8x256xf32>
    %c0_15 = arith.constant 0 : index
    %c0_16 = arith.constant 0 : index
    %21 = vector.load %arg8[%c0_15, %c0_16] : memref<8x256xf32, #tpu.memory_space<vmem>>, vector<8x256xf32>
    tpu.vector_store %arg8[%c0_15, %c0_16], %20 {strides = array<i32>} : memref<8x256xf32, #tpu.memory_space<vmem>>, vector<8x256xf32>,
    return
  }
  func.func @transform_0(%arg0: i32) -> (i32, i32) {
    %c0_i32 = arith.constant 0 : i32
    %c0_i32_0 = arith.constant 0 : i32
    return %c0_i32, %arg0 : i32, i32
  }
  func.func @transform_1(%arg0: i32) -> (i32, i32) {
    %c0_i32 = arith.constant 0 : i32
    %c0_i32_0 = arith.constant 0 : i32
    %c0_i32_1 = arith.constant 0 : i32
    return %c0_i32, %c0_i32_0 : i32, i32
  }
  func.func @transform_2(%arg0: i32) -> (i32, i32) {
    %c0_i32 = arith.constant 0 : i32
    %c0_i32_0 = arith.constant 0 : i32
    %c0_i32_1 = arith.constant 0 : i32
    return %c0_i32, %c0_i32_0 : i32, i32
  }
  func.func @transform_3(%arg0: i32) -> (i32, i32) {
    %c0_i32 = arith.constant 0 : i32
    %c0_i32_0 = arith.constant 0 : i32
    %c0_i32_1 = arith.constant 0 : i32
    return %c0_i32, %c0_i32_0 : i32, i32
  }
  func.func @transform_4(%arg0: i32) -> (i32, i32) {
    %c0_i32 = arith.constant 0 : i32
    %c0_i32_0 = arith.constant 0 : i32
    %c0_i32_1 = arith.constant 0 : i32
    return %c0_i32, %c0_i32_0 : i32, i32
  }
  func.func @transform_5(%arg0: i32) -> (i32, i32) {
    %c0_i32 = arith.constant 0 : i32
    %c0_i32_0 = arith.constant 0 : i32
    %c0_i32_1 = arith.constant 0 : i32
    return %c0_i32, %c0_i32_0 : i32, i32
  }
  func.func @transform_6(%arg0: i32) -> (i32, i32) {
    %c0_i32 = arith.constant 0 : i32
    %c0_i32_0 = arith.constant 0 : i32
    %c0_i32_1 = arith.constant 0 : i32
    return %c0_i32, %c0_i32_0 : i32, i32
  }
  func.func @transform_7(%arg0: i32) -> (i32, i32) {
    %c0_i32 = arith.constant 0 : i32
    %c0_i32_0 = arith.constant 0 : i32
    return %c0_i32, %arg0 : i32, i32
  }
}

</mosaic_0001>

<bundles_post_ra>
// kernel: tpu_custom_call.1
= control target key start
LH: loop header
LB: loop body
LE: loop exit
PB: predicated region body
PF: predicated region fallthrough
CT: control target
= control target key end

     0   :  { %12 = vsyncpa [#allocation3], 0  ;;  %s1148_s0 = inlined_call_operand.vmem [shape: f32[4,512], index: 0, kind: input, shape index: {}]   ;;  %s1149_s1 = inlined_call_operand.vmem [shape: f32[40,4], index: 1, kind: input, shape index: {}]   ;;  %s1150_s2 = inlined_call_operand.vmem [shape: f32[40,1], index: 2, kind: input, shape index: {}]   ;;  %s1151_s3 = inlined_call_operand.vmem [shape: f32[32,32], index: 3, kind: input, shape index: {}]   ;;  %s1152_s4 = inlined_call_operand.vmem [shape: f32[32,1], index: 4, kind: input, shape index: {}]   ;;  %s1153_s5 = inlined_call_operand.vmem [shape: f32[8,32], index: 5, kind: input, shape index: {}]   ;;  %s1154_s6 = inlined_call_operand.vmem [shape: f32[8,1], index: 6, kind: input, shape index: {}]   ;;  %s1155_s7 = inlined_call_operand.hbm [shape: f32[8,512], index: 7, kind: output, shape index: {}]  }
   0x1   :  { %14 = vsyncpa [#allocation3 + $0x1], 0  ;;  %s969_s24 = smov 0   ;;  %s971_s25 = smov 0  }
   0x2   :  { %s973_s26 = smov 0   ;;  %s975_s27 = smov 0  }
   0x3 LB: > { %s990_s28 = sadd.s32 4294967295, %s924_s27   ;;  %s739_s29 = sadd.s32 4294967294, %s924_s27   ;;  %s924_s27 = sphi %s975_s27, %s1161_s27   ;;  %s920_s26 = sphi %s973_s26, %s1160_s26   ;;  %s916_s25 = sphi %s971_s25, %s1159_s25   ;;  %s912_s24 = sphi %s969_s24, %s1158_s24  }
   0x4   : > { %s994_s30 = sadd.s32 1, %s924_s27   ;;  %s179_s8 = sadd.s32 1, %s920_s26 }
   0x5   : > { %s176_s9 = ssub.s32 %s924_s27, %s994_s30  ;;  %p189_p0 = scmp.ne.s32.totalorder %s920_s26, %s916_s25 }
   0x6   : > { %p177_p1 = scmp.eq.s32.totalorder %s176_s9, 0  ;;  %p190_p2 = scmp.eq.s32.totalorder %s990_s28, 1 }
   0x7   : > { %p195_p3 = scmp.ne.s32.totalorder %s916_s25, %s912_s24  ;;  %p196_p4 = scmp.eq.s32.totalorder %s739_s29, 1 }
   0x8   : > { %s1005_s10 = scalar_select %p177_p1, %s920_s26, %s179_s8  }
   0x9   : > { %p1007_p5 = por %p190_p2, %p189_p0  ;;  %p1011_p6 = por %p196_p4, %p195_p3 }
   0xa   : > { %p742_p7 = scmp.ge.s32.totalorder %s924_s27, 1  ;;  %p241_p8 = scmp.lt.s32.totalorder %s924_s27, 3 }
   0xc   : > { %p242_p9 = pnand %p742_p7, %p241_p8 }
   0xd   : > { %s744_s13 = sshll.u32 (!%p242_p9), %s990_s28, 1  ;;  %v926_v0 = vmov (!%p242_p9), 0.0   ;;  %v288_v1 = vld [vmem:[%s1150_s2 + $0x10] sm:$0xff] (!%p242_p9)  ;;  %v927_v2 = vmov (!%p242_p9), 0   ;;  %v286_v3 = vld [vmem:[%s1150_s2] sm:$0xff] (!%p242_p9)  ;;  %v289_v4 = vld [vmem:[%s1150_s2 + $0x18] sm:$0xff] (!%p242_p9) }
   0xe   : > { %245 = sbr.rel (%p242_p9) target bundleno = 746 (0x2ea), region = 48  ;;  %p274_p10 = scmp.lt.s32.totalorder (!%p242_p9), %s744_s13, 3  ;;  %403 = vmatprep.mubr.f32.mxu0 (!%p242_p9), %v926_v0  ;;  %547 = vmatprep.mubr.f32.mxu1 (!%p242_p9), %v926_v0  ;;  %v287_v5 = vld [vmem:[%s1150_s2 + $0x8] sm:$0xff] (!%p242_p9)  ;;  %vm334_vm0 = vcmask (!%p242_p9), 1043456   ;;  %v281_v9 = vld [vmem:[%s1149_s1] sm:$0xff] (!%p242_p9)  ;;  %vm318_vm1 = vcmask (!%p242_p9), 31744  }
   0xf   : > { %828 = vset.pattern.permute.xlu1 (!%p242_p9), %v927_v2  ;;  %827 = vset.pattern.permute.xlu0 (!%p242_p9), %v927_v2  ;;  %v447_v8 = vld [vmem:[%s1152_s4 + $0x8] sm:$0xff] (!%p242_p9)  ;;  %v446_v10 = vld [vmem:[%s1152_s4] sm:$0xff] (!%p242_p9)  ;;  %v449_v11 = vld [vmem:[%s1152_s4 + $0x18] sm:$0xff] (!%p242_p9)  ;;  %vm470_vm2 = vcmask (!%p242_p9), 261120   ;;  %s270_s17 = sand.u32 (!%p242_p9), 1, %s916_s25   ;;  %s763_s18 = sshll.u32 (!%p242_p9), %s990_s28, 8 }
  0x10   : > { %303 = vperm.xlu1 (!%p242_p9), %828, %v288_v1   ;;  %293 = vperm.xlu0 (!%p242_p9), %827, %v286_v3   ;;  %v282_v12 = vld [vmem:[%s1149_s1 + $0x8] sm:$0xff] (!%p242_p9)  ;;  %v448_v13 = vld [vmem:[%s1152_s4 + $0x10] sm:$0xff] (!%p242_p9)  ;;  %v581_v14 = vld [vmem:[%s1154_s6] sm:$0xff] (!%p242_p9)  ;;  %s1106_s23 = scalar_lea.hbm (!%p242_p9), %s1155_s7, %s763_s18  ;;  %s666_s29 = scalar_lea.sflag (!%p242_p9), [#allocation3], %s270_s17 }
  0x11   : > { %v283_v15 = vld [vmem:[%s1149_s1 + $0x10] sm:$0xff] (!%p242_p9)  ;;  %v290_v16 = vld [vmem:[%s1150_s2 + $0x20] sm:$0xff] (!%p242_p9)  ;;  %v284_v17 = vld [vmem:[%s1149_s1 + $0x18] sm:$0xff] (!%p242_p9) }
  0x12   : > { %v442_v50 = vld [vmem:[%s1151_s3] sm:$0xff] (!%p242_p9)  ;;  %v443_v51 = vld [vmem:[%s1151_s3 + $0x8] sm:$0xff] (!%p242_p9)  ;;  %v444_v52 = vld [vmem:[%s1151_s3 + $0x10] sm:$0xff] (!%p242_p9) }
  0x13   : > { %v445_v53 = vld [vmem:[%s1151_s3 + $0x18] sm:$0xff] (!%p242_p9)  ;;  %v285_v54 = vld [vmem:[%s1149_s1 + $0x20] sm:$0xff] (!%p242_p9) }
  0x14   : > { %308 = vperm.xlu1 (!%p242_p9), %828, %v289_v4   ;;  %298 = vperm.xlu0 (!%p242_p9), %827, %v287_v5  }
  0x15   : > { %s1163_s13 = smov (!%p274_p10, %s744_s13), 3 }
  0x16   : > { %s745_s22 = sshll.u32 %s1163_s13, 2  ;;  %s743_s13 = sshll.u32 %s270_s17, 4 }
  0x17   : > { %s277_s8 = scalar_lea.vmem %s1148_s0, %s745_s22  ;;  %s272_s19 = scalar_lea.vmem [#allocation2], %s743_s13 }
  0x18   : > { %v280_v6 = vld [vmem:[%s277_s8] sm:$0xff]  ;;  %457 = vperm.xlu1 %828, %v447_v8   ;;  %452 = vperm.xlu0 %827, %v446_v10   ;;  %s680_s20 = sshll.u32 %s272_s19, 4  ;;  %s928_s8 = smov [#allocation2]   ;;  %s1108_s20 = int_to_ptr.vmem [resolvable:$true] %s680_s20 }
  0x19   : > { %v317_v7 = vcombine.high %v280_v6, %v280_v6  ;;  %s862_s28 = scalar_lea.vmem %s1108_s20, 256  ;;  %s866_s9 = sshll.u32 %s928_s8, 4  ;;  %s867_s9 = int_to_ptr.vmem [resolvable:$false] %s866_s9 }
  0x1a   : > { %p863_p11 = scmp.ne.s32.totalorder %s1108_s20, %s862_s28  ;;  %s868_s14 = scalar_lea.vmem %s867_s9, 512 }
  0x1b   : > { %746 = vmatprep.subr.msk.mxu0 %vm334_vm0, %v317_v7  ;;  %p869_p0 = scmp.lt.s32.totalorder %s1108_s20, %s867_s9  ;;  %p870_p1 = scmp.lt.s32.totalorder %s868_s14, %s862_s28 }
  0x1c   : > { %747 = vmatpush1.msk.msra.mxu0 %vm334_vm0, %v280_v6  ;;  %467 = vperm.xlu1 %828, %v449_v11   ;;  %p864_p12 = pnand %p863_p11, %p1007_p5 }
  0x1d   : > { %748 = vmatmul.mubr.msk.f32.vlgmr.msra.gmra.mrb[0].mxu0 %vm318_vm1, %v281_v9  ;;  %462 = vperm.xlu0 %827, %v448_v13   ;;  %p871_p2 = por %p870_p1, %p869_p0 }
  0x1e   : > { %409 = vmatprep.mubr.f32.mxu0 %v926_v0  ;;  %p865_p13 = pneg %p864_p12 }
  0x20   : > { %584 = vperm.xlu1 %828, %v581_v14   ;;  %p872_p3 = pnand %p871_p2, %p865_p13 }
  0x21   : > { %749 = vmatmul.mubr.msk.f32.gmra.mrb[2].mxu0 %vm318_vm1, %v282_v12  ;;  %313 = vperm.xlu0 %827, %v290_v16  }
  0x22   : > { %415 = vmatprep.mubr.f32.mxu0 %v926_v0 }
  0x25   : > { %750 = vmatmul.mubr.msk.f32.gmra.mrb[4].mxu0 %vm318_vm1, %v283_v15 }
  0x26   : > { %421 = vmatprep.mubr.f32.mxu0 %v926_v0 }
  0x29   : > { %751 = vmatmul.mubr.msk.f32.gmra.mrb[6].mxu0 %vm318_vm1, %v284_v17 }
  0x2a   : > { %427 = vmatprep.mubr.f32.mxu0 %v926_v0 }
  0x2d   : > { %752 = vmatmul.mubr.msk.f32.gmra.mrb[8].mxu0 %vm318_vm1, %v285_v54 }
  0x2e   : > { %654 = vmatprep.mubr.f32.mxu0 %v926_v0 }
  0x8f   : > { %v294_v18 = vpop.permute.xlu0 %293  ;;  %v304_v27 = vpop.permute.xlu1 %303 }
  0x93   : > { %v299_v23 = vpop.permute.xlu0 %298  ;;  %v309_v33 = vpop.permute.xlu1 %308 }
  0x97   : > { %v453_v55 = vpop.permute.xlu0 %452  ;;  %v458_v60 = vpop.permute.xlu1 %457 }
  0x9c   : > { %v463_v2 = vpop.permute.xlu0 %462 }
  0xf0   : > { %v405_v19 = vpop.f32.mrb[0].mxu0 }
  0xf1   : > { %v406_v20 = vadd.f32 %v405_v19, %v294_v18  ;;  %v407_v21 = vpop.f32.mrb[1].mxu0 }
  0xf2   : > { %v408_v22 = vadd.f32 %v407_v21, %v294_v18 }
  0xf3   : > { %830 = vtanh.f32 %v406_v20 }
  0xf4   : > { %v411_v24 = vpop.f32.mrb[2].mxu0  ;;  %832 = vtanh.f32 %v408_v22 }
  0xf5   : > { %v412_v25 = vadd.f32 %v411_v24, %v299_v23  ;;  %v413_v26 = vpop.f32.mrb[3].mxu0 }
  0xf6   : > { %v414_v28 = vadd.f32 %v413_v26, %v299_v23  ;;  %v580_v23 = vld [vmem:[%s1153_s5] sm:$0xff] }
  0xf7   : > { %834 = vtanh.f32 %v412_v25  ;;  %v314_v25 = vpop.permute.xlu0 %313 }
  0xf8   : > { %836 = vtanh.f32 %v414_v28  ;;  %v417_v29 = vpop.f32.mrb[4].mxu0 }
  0xf9   : > { %v418_v30 = vadd.f32 %v417_v29, %v304_v27  ;;  %v419_v31 = vpop.f32.mrb[5].mxu0 }
  0xfa   : > { %v420_v32 = vadd.f32 %v419_v31, %v304_v27 }
  0xfb   : > { %838 = vtanh.f32 %v418_v30 }
  0xfc   : > { %v423_v34 = vpop.f32.mrb[6].mxu0  ;;  %840 = vtanh.f32 %v420_v32 }
  0xfd   : > { %v424_v35 = vadd.f32 %v423_v34, %v309_v33  ;;  %v425_v36 = vpop.f32.mrb[7].mxu0  ;;  %v831_v38 = vpop.eup %830 }
  0xfe   : > { %v426_v37 = vadd.f32 %v425_v36, %v309_v33  ;;  %v833_v39 = vpop.eup %832 }
  0xff   : > { %842 = vtanh.f32 %v424_v35 }
 0x100   : > { %844 = vtanh.f32 %v426_v37 }
 0x101   : > { %v835_v40 = vpop.eup %834 }
 0x102   : > { %v837_v41 = vpop.eup %836  ;;  %v766_v42 = vpack.c.bf16 %v835_v40, %v831_v38 }
 0x103   : > { %v764_v43 = vpack.c.bf16 %v837_v41, %v833_v39 }
 0x105   : > { %765 = vmatprep.subr.bf16.mxu1 %v764_v43  ;;  %v839_v44 = vpop.eup %838 }
 0x106   : > { %767 = vmatpush1.bf16.msra.mxu1 %v766_v42  ;;  %v841_v45 = vpop.eup %840 }
 0x109   : > { %v843_v46 = vpop.eup %842 }
 0x10a   : > { %v845_v47 = vpop.eup %844  ;;  %v770_v48 = vpack.c.bf16 %v843_v46, %v839_v44 }
 0x10b   : > { %v768_v49 = vpack.c.bf16 %v845_v47, %v841_v45 }
 0x10d   : > { %769 = vmatprep.subr.bf16.mxu1 %v768_v49 }
 0x10e   : > { %771 = vmatpush1.bf16.msra.mxu1 %v770_v48 }
 0x111   : > { %753 = vmatmul.mubr.msk.f32.vlgmr.msra.gmra.mrb[0].mxu1 %vm470_vm2, %v442_v50 }
 0x112   : > { %553 = vmatprep.mubr.f32.mxu1 %v926_v0 }
 0x115   : > { %754 = vmatmul.mubr.msk.f32.gmra.mrb[2].mxu1 %vm470_vm2, %v443_v51 }
 0x116   : > { %559 = vmatprep.mubr.f32.mxu1 %v926_v0 }
 0x119   : > { %755 = vmatmul.mubr.msk.f32.gmra.mrb[4].mxu1 %vm470_vm2, %v444_v52 }
 0x11a   : > { %565 = vmatprep.mubr.f32.mxu1 %v926_v0  ;;  %v468_v0 = vpop.permute.xlu1 %467 }
 0x11d   : > { %756 = vmatmul.mubr.msk.f32.gmra.mrb[6].mxu1 %vm470_vm2, %v445_v53 }
 0x11e   : > { %v585_v24 = vpop.permute.xlu1 %584 }
 0x11f   : > { %v780_v26 = vadd.f32 %v585_v24, %v314_v25 }
 0x1e4   : > { %v549_v56 = vpop.f32.mrb[0].mxu1 }
 0x1e5   : > { %v550_v57 = vadd.f32 %v549_v56, %v453_v55  ;;  %v551_v58 = vpop.f32.mrb[1].mxu1 }
 0x1e6   : > { %v552_v59 = vadd.f32 %v551_v58, %v453_v55 }
 0x1e7   : > { %846 = vtanh.f32 %v550_v57 }
 0x1e8   : > { %v555_v61 = vpop.f32.mrb[2].mxu1  ;;  %848 = vtanh.f32 %v552_v59 }
 0x1e9   : > { %v556_v62 = vadd.f32 %v555_v61, %v458_v60  ;;  %v557_v63 = vpop.f32.mrb[3].mxu1 }
 0x1ea   : > { %v558_v1 = vadd.f32 %v557_v63, %v458_v60 }
 0x1eb   : > { %850 = vtanh.f32 %v556_v62 }
 0x1ec   : > { %852 = vtanh.f32 %v558_v1  ;;  %v561_v3 = vpop.f32.mrb[4].mxu1 }
 0x1ed   : > { %v562_v4 = vadd.f32 %v561_v3, %v463_v2  ;;  %v563_v5 = vpop.f32.mrb[5].mxu1 }
 0x1ee   : > { %v564_v6 = vadd.f32 %v563_v5, %v463_v2 }
 0x1ef   : > { %854 = vtanh.f32 %v562_v4 }
 0x1f0   : > { %v567_v7 = vpop.f32.mrb[6].mxu1  ;;  %856 = vtanh.f32 %v564_v6 }
 0x1f1   : > { %v568_v8 = vadd.f32 %v567_v7, %v468_v0  ;;  %v569_v9 = vpop.f32.mrb[7].mxu1  ;;  %v847_v11 = vpop.eup %846 }
 0x1f2   : > { %v570_v10 = vadd.f32 %v569_v9, %v468_v0  ;;  %v849_v12 = vpop.eup %848 }
 0x1f3   : > { %858 = vtanh.f32 %v568_v8 }
 0x1f4   : > { %860 = vtanh.f32 %v570_v10 }
 0x1f5   : > { %v851_v13 = vpop.eup %850 }
 0x1f6   : > { %v853_v14 = vpop.eup %852  ;;  %v774_v15 = vpack.c.bf16 %v851_v13, %v847_v11 }
 0x1f7   : > { %v772_v16 = vpack.c.bf16 %v853_v14, %v849_v12 }
 0x1f9   : > { %773 = vmatprep.subr.bf16.mxu0 %v772_v16  ;;  %v855_v17 = vpop.eup %854 }
 0x1fa   : > { %775 = vmatpush1.bf16.msra.mxu0 %v774_v15  ;;  %v857_v18 = vpop.eup %856 }
 0x1fd   : > { %v859_v19 = vpop.eup %858 }
 0x1fe   : > { %v861_v20 = vpop.eup %860  ;;  %v778_v21 = vpack.c.bf16 %v859_v19, %v855_v17 }
 0x1ff   : > { %v776_v22 = vpack.c.bf16 %v861_v20, %v857_v18 }
 0x201   : > { %777 = vmatprep.subr.bf16.mxu0 %v776_v22 }
 0x202   : > { %779 = vmatpush1.bf16.msra.mxu0 %v778_v21 }
 0x205   : > { %757 = vmatmul.mubr.msk.f32.vlgmr.msra.gmra.mrb[8].mxu0 %vm470_vm2, %v580_v23 }
 0x2d8   : > { %v656_v27 = vpop.f32.mrb[8].mxu0 }
 0x2d9   : > { %v781_v28 = vadd.f32 %v780_v26, %v656_v27  ;;  %v658_v29 = vpop.f32.mrb[9].mxu0 }
 0x2da   : > { %v783_v30 = vadd.f32 %v780_v26, %v658_v29 }
 0x2db   : > { %663 = vst [vmem:[%s272_s19] sm:$0xff] %v781_v28 }
 0x2dc   : > { %664 = vst [vmem:[%s272_s19 + $0x8] sm:$0xff] %v783_v30 }
 0x2dd   : > { %875 = shalt.err (!%p872_p3)
}
 0x2de   : > { %s876_s15 = scalar_lea.hbm %s1106_s23, 256  ;;  %s880_s13 = scalar_lea.hbm %s1155_s7, 512 }
 0x2df   : > { %p877_p4 = scmp.ne.s32.totalorder %s1106_s23, %s876_s15  ;;  %p881_p9 = scmp.lt.u32.totalorder %s1106_s23, %s1155_s7 }
 0x2e0   : > { %p882_p10 = scmp.lt.u32.totalorder %s880_s13, %s876_s15  ;;  %p884_p12 = scmp.lt.u32.totalorder %s876_s15, %s1106_s23 }
 0x2e1   : > { %p878_p7 = pnand %p877_p4, %p1007_p5 }
 0x2e2   : > { %p883_p11 = por %p882_p10, %p881_p9 }
 0x2e3   : > { %p879_p8 = pneg %p878_p7 }
 0x2e4   : > { %p885_p13 = por %p884_p12, %p883_p11 }
 0x2e6   : > { %p886_p0 = pnand %p885_p13, %p879_p8 }
 0x2e8   : > { %889 = shalt.err (!%p886_p0)
}
 0x2e9   : > { %786 = dma.vmem_to_hbm [thread:$0]  (%p1007_p5), %s1108_s20, 256, %s1106_s23, %s666_s29  }
 0x2ea PF: > { %p792_p1 = scmp.ge.s32.totalorder %s924_s27, 2  ;;  %s692_s21 = sand.u32 1, %s912_s24  }
 0x2eb   : > { %s693_s22 = scalar_lea.sflag [#allocation3], %s692_s21 }
 0x2ec   : > { %p789_p2 = pnand %p792_p1, %p1011_p6 }
 0x2ee   : > { %907 = dma.done.wait (!%p789_p2), %s693_s22, 256  }
 0x2ef   : > { %909 = vsyncadd (!%p789_p2), %s693_s22, 4294967040  ;;  %p17_p3 = scmp.ge.s32.totalorder %s994_s30, 4   ;;  %s1158_s24 = smov %s916_s25 }
 0x2f0   : > { %s1159_s25 = smov %s920_s26  ;;  %s1160_s26 = smov %s1005_s10 }
 0x2f1   : > { %s1161_s27 = smov %s994_s30  ;;  %19 = sbr.rel (!%p17_p3) target bundleno = 3 (0x3), region = 83 }
 0x2f8   :  { %698 = vsyncpa [#allocation3], 1 }
 0x2f9   :  { %700 = vsyncpa [#allocation3 + $0x1], 1 }

</bundles_post_ra>
